<compile_context>
chip_gen: v7x
topology: tpu7x:2x2x1
jax: 0.10.0
libtpu: 0.0.40
codegen_flags: <defaults>
</compile_context>

<pallas_src>
import jax
import jax.numpy as jnp
from jax import lax
from jax.experimental import pallas as pl
from jax.experimental.pallas import tpu as pltpu

_LANES = 128
_MAX_TILE_ROWS = 4096          # 4096*128*4B = 2 MiB per f32 tile
_NUM_PARTS = 2                 # partial sums (maps to the 2 TCs on v7x)


def _round_up(a: int, b: int) -> int:
    return ((a + b - 1) // b) * b


def _hinge_sum_kernel(c: float, total: int, tile_rows: int,
                      rows_per_part: int, needs_mask: bool):
    """Kernel body: accumulates sum(relu(c - |x|)) for one part of the data."""

    def kernel(x_ref, out_ref, acc_ref):
        p = pl.program_id(0)          # part index   (parallel axis)
        i = pl.program_id(1)          # tile index   (reduction axis)

        @pl.when(i == 0)
        def _():
            acc_ref[...] = jnp.zeros_like(acc_ref)

        # (1, tile_rows, 128) block -> (tile_rows, 128), upcast on-vreg.
        x = x_ref[0].astype(jnp.float32)
        loss = jnp.maximum(c - jnp.abs(x), 0.0)

        if needs_mask:
            # Mask zero-padded tail elements (flat index >= total).
            # int32 is fine for any realistic element count (< 2**31).
            row = lax.broadcasted_iota(jnp.int32, (tile_rows, _LANES), 0)
            lane = lax.broadcasted_iota(jnp.int32, (tile_rows, _LANES), 1)
            flat = (p * rows_per_part + i * tile_rows + row) * _LANES + lane
            loss = jnp.where(flat < total, loss, 0.0)

        acc_ref[...] += jnp.sum(loss)

        @pl.when(i == pl.num_programs(1) - 1)
        def _():
            out_ref[0] = acc_ref[...]          # single store per part

    return kernel


def hinge_loss3(inputs: jax.Array, target: jax.Array, c: float = 1.0) -> jax.Array:
    """Pallas implementation of HingeLoss3.forward (returns the loss1 scalar).

    `target` is accepted for API compatibility but is not read: with labels in
    {0,1}, |(2t-1) * x| == |x| exactly.
    """
    del target  # mathematically dead under the abs (labels in {0,1}).

    # Keep bf16 in HBM (halves the bytes streamed); upcast happens in-kernel.
    if inputs.dtype not in (jnp.bfloat16, jnp.float32):
        inputs = inputs.astype(jnp.float32)

    total = int(inputs.size)

    # Lane-dense layout: flatten, pad, reshape to (NUM_PARTS, rows_per_part, 128).
    rows_needed = pl.cdiv(total, _LANES)
    tile_rows = min(_MAX_TILE_ROWS, _round_up(rows_needed, 8))
    rows_padded = _round_up(rows_needed, _NUM_PARTS * tile_rows)
    tiles_per_part = rows_padded // (_NUM_PARTS * tile_rows)
    rows_per_part = tiles_per_part * tile_rows
    padded_total = rows_padded * _LANES
    needs_mask = padded_total != total

    flat = inputs.reshape(-1)
    if needs_mask:
        flat = jnp.pad(flat, (0, padded_total - total))
    x = flat.reshape(_NUM_PARTS, rows_per_part, _LANES)

    itemsize = jnp.dtype(x.dtype).itemsize
    cost = pl.CostEstimate(
        flops=3 * padded_total,
        transcendentals=0,
        bytes_accessed=padded_total * itemsize + _NUM_PARTS * 4,
    )

    partials = pl.pallas_call(
        _hinge_sum_kernel(float(c), total, tile_rows, rows_per_part, needs_mask),
        out_shape=jax.ShapeDtypeStruct((_NUM_PARTS, 1, 1), jnp.float32),
        grid_spec=pltpu.PrefetchScalarGridSpec(
            num_scalar_prefetch=0,
            grid=(_NUM_PARTS, tiles_per_part),
            in_specs=[
                pl.BlockSpec((1, tile_rows, _LANES), lambda p, i: (p, i, 0)),
            ],
            out_specs=pl.BlockSpec((1, 1, 1), lambda p, i: (p, 0, 0)),
            scratch_shapes=[pltpu.VMEM((1, 1), jnp.float32)],
        ),
        compiler_params=pltpu.CompilerParams(
            dimension_semantics=("parallel", "arbitrary"),
        ),
        cost_estimate=cost,
    )(x)

    # Combine the per-part partial sums; compile-time reciprocal (no divide).
    return jnp.sum(partials) * (1.0 / float(total))


def _reference(inputs, target, c=1.0):
    """Pure-JAX reference mirroring the PyTorch module exactly."""
    t = target.reshape(-1, 1).astype(jnp.float32)
    t = 2.0 * t - 1.0
    loss = c - jnp.abs(t * inputs.astype(jnp.float32))
    loss = jnp.where(loss < 0, 0.0, loss)
    return jnp.mean(loss)
    # TODO(synk): loss2 (sign/eq accuracy term) is computed-then-discarded in
    # the original module, so it is intentionally not emitted.


if __name__ == "__main__":
    key = jax.random.PRNGKey(0)
    k1, k2 = jax.random.split(key)

    N, D = 256, 1                       # binary hinge: one logit per sample
    inputs = jax.random.normal(k1, (N, D), dtype=jnp.float32) * 2.0
    target = jax.random.bernoulli(k2, 0.5, (N,)).astype(jnp.float32)  # {0,1}

    loss = hinge_loss3(inputs, target, c=1.0)
    loss = jax.block_until_ready(loss)

    ref = _reference(inputs, target, c=1.0)
    assert jnp.allclose(loss, ref, rtol=1e-5, atol=1e-6), (loss, ref)

    # Also exercise the bf16 fast path (kernel-side upcast) at an odd size
    # that forces tail masking.
    inputs_bf = (jax.random.normal(k1, (37, 5), dtype=jnp.float32) * 2.0
                 ).astype(jnp.bfloat16)
    target_bf = jax.random.bernoulli(k2, 0.5, (37,)).astype(jnp.float32)
    loss_bf = jax.block_until_ready(hinge_loss3(inputs_bf, target_bf, c=1.0))
    ref_bf = _reference(inputs_bf.astype(jnp.float32), target_bf, c=1.0)
    assert jnp.allclose(loss_bf, ref_bf, rtol=2e-3, atol=2e-3), (loss_bf, ref_bf)

    print("KERNEL_OK")
</pallas_src>

<mosaic_0001>
module attributes {stable_mosaic.version = 11 : i64} {
  func.func @kernel(%arg0: i32, %arg1: i32, %arg2: memref<1x8x128xf32, #tpu.memory_space<vmem>>, %arg3: memref<1x1x1xf32, #tpu.memory_space<vmem>>, %arg4: memref<1x1xf32, #tpu.memory_space<vmem>>) attributes {dimension_semantics = [#tpu.dimension_semantics<parallel>, #tpu.dimension_semantics<arbitrary>], iteration_bounds = array<i64: 2, 1>, scalar_prefetch = 0 : i64, scratch_operands = 1 : i64, tpu.core_type = #tpu.core_type<tc>, window_params = [{transform_indices = @transform_0, window_bounds = array<i64: 1, 8, 128>}, {transform_indices = @transform_1, window_bounds = array<i64: 1, 1, 1>}]} {
    %c0_i32 = arith.constant 0 : i32
    %0 = arith.cmpi eq, %arg1, %c0_i32 : i32
    %1 = arith.extui %0 : i1 to i32
    %c0_i32_0 = arith.constant 0 : i32
    %2 = arith.cmpi ne, %1, %c0_i32_0 : i32
    scf.if %2 {
      %cst_13 = arith.constant 0.000000e+00 : f32
      %35 = vector.broadcast %cst_13 : f32 to vector<1x1xf32>
      %c0_14 = arith.constant 0 : index
      %c0_15 = arith.constant 0 : index
      %36 = vector.load %arg4[%c0_14, %c0_15] : memref<1x1xf32, #tpu.memory_space<vmem>>, vector<1x1xf32>
      tpu.vector_store %arg4[%c0_14, %c0_15], %35 {strides = array<i32>} : memref<1x1xf32, #tpu.memory_space<vmem>>, vector<1x1xf32>,
    } else {
    }
    %c0 = arith.constant 0 : index
    %c0_1 = arith.constant 0 : index
    %c0_2 = arith.constant 0 : index
    %3 = vector.load %arg2[%c0, %c0_1, %c0_2] : memref<1x8x128xf32, #tpu.memory_space<vmem>>, vector<1x8x128xf32>
    %4 = vector.shape_cast %3 : vector<1x8x128xf32> to vector<8x128xf32>
    %5 = math.absf %4 : vector<8x128xf32>
    %cst = arith.constant 1.000000e+00 : f32
    %6 = vector.broadcast %cst : f32 to vector<8x128xf32>
    %7 = arith.subf %6, %5 : vector<8x128xf32>
    %cst_3 = arith.constant 0.000000e+00 : f32
    %8 = vector.broadcast %cst_3 : f32 to vector<8x128xf32>
    %9 = arith.maximumf %7, %8 : vector<8x128xf32>
    %10 = tpu.iota {dimensions = array<i32: 0>} : vector<8x128xi32>
    %11 = tpu.iota {dimensions = array<i32: 1>} : vector<8x128xi32>
    %c8_i32 = arith.constant 8 : i32
    %12 = arith.muli %arg0, %c8_i32 : i32
    %c8_i32_4 = arith.constant 8 : i32
    %13 = arith.muli %arg1, %c8_i32_4 : i32
    %14 = arith.addi %12, %13 : i32
    %15 = vector.broadcast %14 : i32 to vector<8x128xi32>
    %16 = arith.addi %15, %10 : vector<8x128xi32>
    %c128_i32 = arith.constant 128 : i32
    %17 = vector.broadcast %c128_i32 : i32 to vector<8x128xi32>
    %18 = arith.muli %16, %17 : vector<8x128xi32>
    %19 = arith.addi %18, %11 : vector<8x128xi32>
    %c256_i32 = arith.constant 256 : i32
    %20 = vector.broadcast %c256_i32 : i32 to vector<8x128xi32>
    %21 = arith.cmpi slt, %19, %20 : vector<8x128xi32>
    %cst_5 = arith.constant 0.000000e+00 : f32
    %22 = vector.broadcast %cst_5 : f32 to vector<8x128xf32>
    %23 = arith.select %21, %9, %22 : vector<8x128xi1>, vector<8x128xf32>
    %c0_6 = arith.constant 0 : index
    %c0_7 = arith.constant 0 : index
    %24 = vector.load %arg4[%c0_6, %c0_7] : memref<1x1xf32, #tpu.memory_space<vmem>>, vector<1x1xf32>
    %25 = vector.shape_cast %23 : vector<8x128xf32> to vector<1x8x128xf32>
    %cst_8 = arith.constant dense<0.000000e+00> : vector<1xf32>
    %26 = vector.multi_reduction <add>, %25, %cst_8 [1, 2] : vector<1x8x128xf32> to vector<1xf32>
    %27 = vector.shape_cast %26 : vector<1xf32> to vector<1x1x1xf32>
    %28 = vector.extract %27[0, 0, 0] : f32 from vector<1x1x1xf32>
    %29 = vector.broadcast %28 : f32 to vector<1x1xf32>
    %30 = arith.addf %24, %29 : vector<1x1xf32>
    %c0_9 = arith.constant 0 : index
    %c0_10 = arith.constant 0 : index
    %31 = vector.load %arg4[%c0_9, %c0_10] : memref<1x1xf32, #tpu.memory_space<vmem>>, vector<1x1xf32>
    tpu.vector_store %arg4[%c0_9, %c0_10], %30 {strides = array<i32>} : memref<1x1xf32, #tpu.memory_space<vmem>>, vector<1x1xf32>,
    %c0_i32_11 = arith.constant 0 : i32
    %32 = arith.cmpi eq, %arg1, %c0_i32_11 : i32
    %33 = arith.extui %32 : i1 to i32
    %c0_i32_12 = arith.constant 0 : i32
    %34 = arith.cmpi ne, %33, %c0_i32_12 : i32
    scf.if %34 {
      %c0_13 = arith.constant 0 : index
      %c0_14 = arith.constant 0 : index
      %35 = vector.load %arg4[%c0_13, %c0_14] : memref<1x1xf32, #tpu.memory_space<vmem>>, vector<1x1xf32>
      %c0_15 = arith.constant 0 : index
      %c0_16 = arith.constant 0 : index
      %c0_17 = arith.constant 0 : index
      %36 = vector.load %arg3[%c0_15, %c0_16, %c0_17] : memref<1x1x1xf32, #tpu.memory_space<vmem>>, vector<1x1x1xf32>
      %37 = vector.shape_cast %36 : vector<1x1x1xf32> to vector<1x1xf32>
      %38 = vector.shape_cast %35 : vector<1x1xf32> to vector<1x1x1xf32>
      tpu.vector_store %arg3[%c0_15, %c0_16, %c0_17], %38 {strides = array<i32>} : memref<1x1x1xf32, #tpu.memory_space<vmem>>, vector<1x1x1xf32>,
    } else {
    }
    return
  }
  func.func @transform_0(%arg0: i32, %arg1: i32) -> (i32, i32, i32) {
    %c0_i32 = arith.constant 0 : i32
    %c0_i32_0 = arith.constant 0 : i32
    return %arg0, %arg1, %c0_i32 : i32, i32, i32
  }
  func.func @transform_1(%arg0: i32, %arg1: i32) -> (i32, i32, i32) {
    %c0_i32 = arith.constant 0 : i32
    %c0_i32_0 = arith.constant 0 : i32
    %c0_i32_1 = arith.constant 0 : i32
    return %arg0, %c0_i32, %c0_i32_0 : i32, i32, i32
  }
}

</mosaic_0001>

<bundles_post_ra>
// kernel: tpu_custom_call.1
= control target key start
LH: loop header
LB: loop body
LE: loop exit
PB: predicated region body
PF: predicated region fallthrough
CT: control target
= control target key end

     0   :  { %6 = vsyncpa [#allocation4], 0  ;;  %s547_s0 = inlined_call_operand.hbm [shape: f32[2,8,128], index: 0, kind: input, shape index: {}]   ;;  %s548_s1 = inlined_call_operand.vmem [shape: f32[2,1,1], index: 1, kind: output, shape index: {}]  }
   0x1   :  { %8 = vsyncpa [#allocation4 + $0x1], 0  ;;  %s418_s6 = smov 0   ;;  %s420_s7 = smov 0  }
   0x2   :  { %s422_s8 = smov 0   ;;  %s424_s9 = smov 0  }
   0x3   :  { %s426_s10 = smov 0   ;;  %s428_s11 = smov 0  }
   0x4 LB: > { %s255_s12 = sadd.s32 4294967295, %s404_s11   ;;  %s26_s13 = sadd.s32 1, %s400_s10  ;;  %s404_s11 = sphi %s428_s11, %s14_s11   ;;  %s400_s10 = sphi %s426_s10, %s558_s10   ;;  %s396_s9 = sphi %s424_s9, %s557_s9   ;;  %s392_s8 = sphi %s422_s8, %s556_s8   ;;  %s388_s7 = sphi %s420_s7, %s555_s7   ;;  %s384_s6 = sphi %s418_s6, %s554_s6  }
   0x5   : > { %p28_p0 = scmp.ge.s32.totalorder %s26_s13, 2  ;;  %s35_s14 = sadd.s32 1, %s392_s8 }
   0x6   : > { %p42_p1 = scmp.ne.s32.totalorder %s392_s8, %s388_s7  ;;  %p43_p2 = scmp.eq.s32.totalorder %s404_s11, 0 }
   0x7   : > { %s560_s13 = smov (%p28_p0, %s26_s13), 0  ;;  %p48_p4 = scmp.ne.s32.totalorder %s388_s7, %s384_s6 }
   0x8   : > { %p454_p3 = por %p43_p2, %p42_p1  ;;  %s30_s16 = ssub.s32 %s400_s10, %s560_s13 }
   0x9   : > { %p49_p5 = scmp.eq.s32.totalorder %s255_s12, 0  ;;  %p33_p6 = scmp.eq.s32.totalorder %s30_s16, 0 }
   0xa   : > { %p274_p8 = scmp.lt.s32.totalorder %s404_s11, 2  ;;  %s98_s19 = sand.u32 1, %s392_s8  }
   0xb   : > { %p461_p7 = por %p49_p5, %p48_p4  ;;  %s260_s20 = sshll.u32 %s400_s10, 7 }
   0xc   : > { %s467_s18 = scalar_select %p33_p6, %s392_s8, %s35_s14  }
   0xd   : > { %s259_s21 = sshll.u32 %s98_s19, 3  ;;  %s474_s24 = scalar_lea.hbm %s547_s0, %s260_s20 }
   0xe   : > { %s102_s25 = scalar_lea.vmem [#allocation3], %s259_s21  ;;  %p478_p9 = pnand %p274_p8, %p454_p3 }
   0xf   : > { %s110_s26 = sshll.u32 %s102_s25, 4  ;;  %s99_s28 = scalar_lea.sflag [#allocation4], %s98_s19  ;;  %s482_s26 = int_to_ptr.vmem [resolvable:$true] %s110_s26 }
  0x10   : > { %s324_s29 = scalar_lea.hbm %s474_s24, 128  ;;  %p326_p13 = pneg %p478_p9 }
  0x11   : > { %p325_p12 = scmp.ne.s32.totalorder %s474_s24, %s324_s29  ;;  %s329_s3 = scalar_lea.hbm %s547_s0, 256 }
  0x12   : > { %p330_p2 = scmp.lt.u32.totalorder %s474_s24, %s547_s0  ;;  %p331_p3 = scmp.lt.u32.totalorder %s329_s3, %s324_s29 }
  0x13   : > { %p327_p0 = pnand %p326_p13, %p325_p12  ;;  %p333_p5 = scmp.lt.u32.totalorder %s324_s29, %s474_s24 }
  0x14   : > { %p332_p4 = por %p331_p3, %p330_p2 }
  0x15   : > { %p328_p1 = pneg %p327_p0 }
  0x16   : > { %p334_p6 = por %p333_p5, %p332_p4 }
  0x18   : > { %p335_p8 = pnand %p334_p6, %p328_p1 }
  0x1a   : > { %338 = shalt.err (!%p335_p8)
}
  0x1b   : > { %s339_s6 = scalar_lea.vmem %s482_s26, 128  ;;  %s406_s12 = smov [#allocation3]  }
  0x1c   : > { %p340_p12 = scmp.ne.s32.totalorder %s482_s26, %s339_s6  ;;  %s344_s14 = sshll.u32 %s406_s12, 4  ;;  %s345_s14 = int_to_ptr.vmem [resolvable:$false] %s344_s14 }
  0x1d   : > { %s346_s15 = scalar_lea.vmem %s345_s14, 256  ;;  %p347_p11 = scmp.lt.s32.totalorder %s482_s26, %s345_s14 }
  0x1e   : > { %p342_p0 = pnand %p340_p12, %p326_p13  ;;  %p348_p2 = scmp.lt.s32.totalorder %s346_s15, %s339_s6 }
  0x20   : > { %p343_p10 = pneg %p342_p0  ;;  %p349_p3 = por %p348_p2, %p347_p11 }
  0x22   : > { %p350_p4 = pnand %p349_p3, %p343_p10 }
  0x24   : > { %353 = shalt.err (!%p350_p4)
}
  0x25   : > { %273 = dma.hbm_to_vmem [thread:$0]  (!%p478_p9), %s474_s24, 128, %s482_s26, %s99_s28  }
  0x26   : > { %p552_p1 = scmp.lt.s32.totalorder %s404_s11, 3  ;;  %p553_p5 = scmp.ge.s32.totalorder %s404_s11, 1 }
  0x28   : > { %p116_p13 = pnand %p553_p5, %p552_p1 }
  0x29   : > { %s121_s16 = sand.u32 (!%p116_p13), 1, %s388_s7  }
  0x2a   : > { %119 = sbr.rel (%p116_p13) target bundleno = 278 (0x116), region = 24  ;;  %s262_s19 = sshll.u32 (!%p116_p13), %s121_s16, 3 }
  0x2b   : > { %s122_s20 = scalar_lea.sflag (!%p116_p13), [#allocation4], %s121_s16  ;;  %s125_s21 = scalar_lea.vmem (!%p116_p13), [#allocation3], %s262_s19 }
  0x31   : > { %379 = dma.done.wait (%p461_p7), %s122_s20, 128  }
  0x32   : > { %381 = vsyncadd (%p461_p7), %s122_s20, 4294967168  ;;  %vm149_vm0 = vcmask 0   ;;  %v155_v0 = vlaneseq  ;;  %s263_s22 = sshll.u32 %s396_s9, 3  ;;  %v407_v1 = vmov 0.0   ;;  %v151_v7 = vld [vmem:[%s125_s21] sm:$0xff]  ;;  %p142_p7 = scmp.lt.s32.totalorder %s396_s9, 1 }
  0x33   : > { %150 = vst.msk [vmem:[#allocation2] sm:$0x1] %vm149_vm0, %v407_v1  ;;  %v162_v2 = vstv %s263_s22  ;;  %v152_v8 = vand.u32 2147483647, %v151_v7 }
  0x34   : > { %v156_v3 = vshrl.u32 %v155_v0, 7  ;;  %v158_v4 = vand.u32 127, %v155_v0  ;;  %s562_s9 = smov (!%p142_p7, %s396_s9), 1 }
  0x35   : > { %v153_v10 = vsub.f32 1.0, %v152_v8  ;;  %s144_s25 = scalar_lea.vmem %s548_s1, %s562_s9 }
  0x36   : > { %v163_v5 = vadd.s32 %v162_v2, %v156_v3 }
  0x37   : > { %v154_v11 = vmax.f32 %v153_v10, 0.0 }
  0x38   : > { %v164_v6 = vmul.u32 128, %v163_v5 }
  0x3a   : > { %v165_v9 = vadd.s32 %v164_v6, %v158_v4  ;;  %v168_v20 = vld [vmem:[#allocation2] sm:$0x1] }
  0x3c   : > { %vm166_vm1 = vcmp.lt.s32.totalorder %v165_v9, 256 }
  0x3d   : > { %v167_v12 = vsel %vm166_vm1, %v154_v11, 0.0 }
  0x3e   : > { %169 = vadd.xlane.f32.xlu0 %v167_v12 }
  0xcb   : > { %v170_v13 = vpop.xlane.xlu0 %169 }
  0xcc   : > { %v171_v14 = vrot.slane %v170_v13, 4 }
  0xce   : > { %v172_v15 = vadd.f32 %v171_v14, %v170_v13 }
  0xd0   : > { %v173_v16 = vrot.slane %v172_v15, 2 }
  0xd2   : > { %v174_v17 = vadd.f32 %v173_v16, %v172_v15 }
  0xd4   : > { %v175_v18 = vrot.slane %v174_v17, 1 }
  0xd6   : > { %v176_v19 = vadd.f32 %v175_v18, %v174_v17 }
  0xd8   : > { %266 = vpush %v176_v19 }
 0x109   : > { %s267_s17 = spop %266 }
 0x10a   : > { %v178_v21 = vstv %s267_s17 }
 0x10b   : > { %v179_v22 = vadd.f32 %v178_v21, %v168_v20 }
 0x10d   : > { %181 = vst.msk [vmem:[#allocation2] sm:$0x1] %vm149_vm0, %v179_v22 }
 0x114   : > { %v185_v23 = vld [vmem:[#allocation2] sm:$0x1] }
 0x115   : > { %186 = vst.msk [vmem:[%s144_s25] sm:$0x1] %vm149_vm0, %v185_v23 }
 0x116 PF: > { %s14_s11 = sadd.s32 1, %s404_s11   ;;  %s554_s6 = smov %s388_s7 }
 0x117   : > { %p11_p9 = scmp.ge.s32.totalorder %s14_s11, 4   ;;  %s555_s7 = smov %s392_s8 }
 0x118   : > { %s556_s8 = smov %s467_s18  ;;  %s557_s9 = smov %s400_s10 }
 0x119   : > { %s558_s10 = smov %s560_s13  ;;  %13 = sbr.rel (!%p11_p9) target bundleno = 4 (0x4), region = 72 }
 0x120   :  { %204 = vsyncpa [#allocation4], 1 }
 0x121   :  { %206 = vsyncpa [#allocation4 + $0x1], 1 }

</bundles_post_ra>
